<compile_context>
chip_gen: v7x
topology: tpu7x:2x2x1
jax: 0.10.0
libtpu: 0.0.40
codegen_flags: <defaults>
</compile_context>

<pallas_src>
import jax
import jax.numpy as jnp
from jax.experimental import pallas as pl
from jax.experimental.pallas import tpu as pltpu

_MiB = 1024 * 1024


def _round_up(x, m):
    return ((x + m - 1) // m) * m


def _vmem_capacity_bytes():
    """Best-effort per-core VMEM capacity; conservative fallback (v7x = 64 MiB)."""
    try:
        info = pltpu.get_tpu_info()
        for name in ("vmem_capacity_bytes", "vmem_size_bytes", "vmem_bytes"):
            v = getattr(info, name, None)
            if v:
                return int(v)
    except Exception:
        pass
    return 64 * _MiB


def _batch_tile_candidates(B, max_block_b):
    """Descending block_b candidates (multiples of 8, or the full B if B < 8)."""
    if B < 8:
        return [B]
    cap = min(_round_up(B, 8), 256, max(8, _round_up(max_block_b, 8)))
    cands = [c for c in (256, 128, 64, 32, 16, 8) if c <= cap]
    if cap not in cands:
        cands.insert(0, cap)
    return cands


def _choose_tiles(B, C, HW, itemsize, in_tile_budget, max_block_b):
    """Pick (block_b, block_hw) for the streamed (block_b, C, block_hw) tile."""
    b_cands = _batch_tile_candidates(B, max_block_b)

    # Preferred: full spatial extent -> each input tile is one contiguous HBM
    # region of block_b*C*HW*itemsize bytes (near-roofline DMA).
    for bb in b_cands:
        if bb * C * HW * itemsize <= in_tile_budget:
            return bb, HW

    # Otherwise tile the spatial axis in multiples of 128 lanes; prefer chunks
    # of >= 512 lanes (large DMA segments), then the largest batch tile.
    best_bb, best_hw = b_cands[-1], 0
    for bb in b_cands:
        max_hw = (in_tile_budget // (bb * C * itemsize)) // 128 * 128
        if max_hw >= 512:
            return bb, int(max_hw)
        if max_hw > best_hw:
            best_bb, best_hw = bb, int(max_hw)
    if best_hw >= 128:
        return best_bb, best_hw
    # Degenerate (enormous C): smallest legal chunk; vmem_limit below follows
    # the actual block sizes, so this still compiles whenever it physically fits.
    return b_cands[-1], 128


def _make_kernel(HW, block_hw):
    needs_hw_mask = (HW % block_hw) != 0  # only edge spatial chunks need masking

    def kernel(x_ref, wt_ref, b_ref, o_ref, acc_ref):
        # x_ref  : (TB, C, THW)  streamed activation chunk (native dtype)
        # wt_ref : (C, OUT_pad)  pre-transposed, pre-scaled (1/HW) weight, f32
        # b_ref  : (1, OUT_pad)  bias, f32
        # o_ref  : (TB, OUT_pad) output tile
        # acc_ref: (TB, C)       f32 running spatial sum (resident across k)
        k = pl.program_id(1)

        @pl.when(k == 0)
        def _():
            acc_ref[...] = jnp.zeros_like(acc_ref)

        x = x_ref[...]
        if needs_hw_mask:
            lane = jax.lax.broadcasted_iota(jnp.int32, x.shape, x.ndim - 1)
            valid = (k * block_hw + lane) < HW
            x = jnp.where(valid, x, jnp.zeros((), x.dtype))
        # f32 accumulation without materializing an upcast copy of the block.
        acc_ref[...] += jnp.sum(x, axis=-1, dtype=jnp.float32)

        @pl.when(k == pl.num_programs(1) - 1)
        def _():
            # adaptive_avg_pool2d + Linear: (sum/HW) @ W^T + b, with 1/HW folded
            # into wt_ref at trace time.
            out = jnp.dot(acc_ref[...], wt_ref[...],
                          preferred_element_type=jnp.float32)
            o_ref[...] = (out + b_ref[...]).astype(o_ref.dtype)

    return kernel


def class_predict(x_nchw, weight, bias):
    """Forward pass of ClassPredict: mean over (H, W), then Linear.

    x_nchw : (B, C, H, W) float32 or bfloat16
    weight : (out_dim, C)  (same layout as nn.Linear.weight)
    bias   : (out_dim,)
    returns: (B, out_dim) float32
    """
    B, C, H, W = x_nchw.shape
    out_dim, in_ch = weight.shape
    assert in_ch == C, (weight.shape, C)
    HW = H * W
    itemsize = jnp.dtype(x_nchw.dtype).itemsize

    OUT_pad = _round_up(out_dim, 128)  # lane-dense weight/bias/output (no vst.msk)

    # --- generation-aware budgets --------------------------------------------
    vmem_cap = _vmem_capacity_bytes()
    if vmem_cap >= 100 * _MiB:         # v5e / v6e: 128 MiB VMEM per core
        in_tile_budget = 16 * _MiB
        vmem_cap_limit = 96 * _MiB
    else:                              # v7x: 64 MiB per TensorCore
        in_tile_budget = 6 * _MiB
        vmem_cap_limit = 48 * _MiB

    # Keep >= 2 batch tiles when B allows, so the "parallel" batch axis can
    # shard across v7x's two TensorCores (harmless on 1-TC chips).
    max_block_b = B if B < 16 else _round_up(-(-B // 2), 8)

    block_b, block_hw = _choose_tiles(B, C, HW, itemsize,
                                      in_tile_budget, max_block_b)
    grid = (pl.cdiv(B, block_b), pl.cdiv(HW, block_hw))

    # --- tiny HBM-side glue (NO padding / copying of the activation) ---------
    x_flat = x_nchw.reshape(B, C, HW)

    # Fold the mean's 1/HW into the small pre-transposed weight (exact, f32).
    w_t = weight.T.astype(jnp.float32) / float(HW)            # (C, out_dim)
    w_t = jnp.pad(w_t, ((0, 0), (0, OUT_pad - out_dim)))
    b2d = jnp.pad(bias.astype(jnp.float32).reshape(1, out_dim),
                  ((0, 0), (0, OUT_pad - out_dim)))

    # --- VMEM limit derived from actual block sizes ---------------------------
    in_tile_bytes = block_b * C * block_hw * itemsize
    w_bytes = C * OUT_pad * 4
    bias_bytes = OUT_pad * 4
    out_tile_bytes = block_b * OUT_pad * 4
    acc_bytes = block_b * C * 4
    need = (2 * in_tile_bytes             # double-buffered streamed input
            + 2 * (w_bytes + bias_bytes)  # conservative (covers fallback path)
            + 2 * out_tile_bytes
            + acc_bytes)
    vmem_limit = int(min(vmem_cap_limit, max(32 * _MiB, need + 8 * _MiB)))

    cost = pl.CostEstimate(
        flops=2 * B * C * out_dim + B * C * HW,
        transcendentals=0,
        bytes_accessed=(B * C * HW * itemsize
                        + C * OUT_pad * 4 + OUT_pad * 4 + B * OUT_pad * 4),
    )

    kernel = _make_kernel(HW, block_hw)

    def build(single_buffer_consts):
        const_kw = ({"pipeline_mode": pl.Buffered(1)}
                    if single_buffer_consts else {})
        grid_spec = pltpu.PrefetchScalarGridSpec(
            num_scalar_prefetch=0,
            grid=grid,
            in_specs=[
                pl.BlockSpec((block_b, C, block_hw), lambda b, k: (b, 0, k)),
                pl.BlockSpec((C, OUT_pad), lambda b, k: (0, 0), **const_kw),
                pl.BlockSpec((1, OUT_pad), lambda b, k: (0, 0), **const_kw),
            ],
            out_specs=pl.BlockSpec((block_b, OUT_pad), lambda b, k: (b, 0)),
            scratch_shapes=[pltpu.VMEM((block_b, C), jnp.float32)],
        )
        return pl.pallas_call(
            kernel,
            out_shape=jax.ShapeDtypeStruct((B, OUT_pad), jnp.float32),
            grid_spec=grid_spec,
            compiler_params=pltpu.CompilerParams(
                dimension_semantics=("parallel", "arbitrary"),
                vmem_limit_bytes=vmem_limit,
            ),
            cost_estimate=cost,
        )

    try:
        # Constant-index weight/bias blocks: single-buffer them (saves VMEM).
        out = build(single_buffer_consts=True)(x_flat, w_t, b2d)
    except Exception:
        # This JAX build rejects pipeline_mode on pallas_call BlockSpecs:
        # fall back to default double-buffering of the tiny constant operands.
        out = build(single_buffer_consts=False)(x_flat, w_t, b2d)

    return out[:, :out_dim]


if __name__ == "__main__":
    # Small shapes consistent with the module's forward.
    B, C, H, W = 2, 4, 16, 16
    out_dim = 8

    key = jax.random.PRNGKey(0)
    kx, kw, kb = jax.random.split(key, 3)

    x = jax.random.normal(kx, (B, C, H, W), dtype=jnp.float32)
    # torch.nn.init.normal_(weight, std=0.03)
    weight = 0.03 * jax.random.normal(kw, (out_dim, C), dtype=jnp.float32)
    # nn.Linear default bias init: uniform(-1/sqrt(C), 1/sqrt(C))
    bound = 1.0 / float(C) ** 0.5
    bias = jax.random.uniform(kb, (out_dim,), minval=-bound, maxval=bound,
                              dtype=jnp.float32)

    out = class_predict(x, weight, bias)
    out = jax.block_until_ready(out)

    # Reference check in plain JAX (same math as the PyTorch module).
    pooled_ref = jnp.mean(x, axis=(2, 3))          # adaptive_avg_pool2d -> view
    ref = pooled_ref @ weight.T + bias             # nn.Linear
    assert out.shape == (B, out_dim)
    assert jnp.allclose(out, ref, atol=1e-5, rtol=1e-5), (
        f"max abs err {float(jnp.max(jnp.abs(out - ref)))}")

    print("KERNEL_OK")
</pallas_src>

<mosaic_0001>
module attributes {stable_mosaic.version = 11 : i64} {
  func.func @kernel(%arg0: i32, %arg1: i32, %arg2: memref<2x4x256xf32, #tpu.memory_space<vmem>>, %arg3: memref<4x128xf32, #tpu.memory_space<vmem>>, %arg4: memref<1x128xf32, #tpu.memory_space<vmem>>, %arg5: memref<2x128xf32, #tpu.memory_space<vmem>>, %arg6: memref<2x4xf32, #tpu.memory_space<vmem>>) attributes {dimension_semantics = [#tpu.dimension_semantics<parallel>, #tpu.dimension_semantics<arbitrary>], iteration_bounds = array<i64: 1, 1>, scalar_prefetch = 0 : i64, scratch_operands = 1 : i64, tpu.core_type = #tpu.core_type<tc>, window_params = [{transform_indices = @transform_0, window_bounds = array<i64: 2, 4, 256>}, {pipeline_mode = #tpu.pipeline_mode<synchronous>, transform_indices = @transform_1, window_bounds = array<i64: 4, 128>}, {pipeline_mode = #tpu.pipeline_mode<synchronous>, transform_indices = @transform_2, window_bounds = array<i64: 1, 128>}, {transform_indices = @transform_3, window_bounds = array<i64: 2, 128>}]} {
    %c0_i32 = arith.constant 0 : i32
    %0 = arith.cmpi eq, %arg1, %c0_i32 : i32
    %1 = arith.extui %0 : i1 to i32
    %c0_i32_0 = arith.constant 0 : i32
    %2 = arith.cmpi ne, %1, %c0_i32_0 : i32
    scf.if %2 {
      %cst_9 = arith.constant 0.000000e+00 : f32
      %11 = vector.broadcast %cst_9 : f32 to vector<2x4xf32>
      %c0_10 = arith.constant 0 : index
      %c0_11 = arith.constant 0 : index
      %12 = vector.load %arg6[%c0_10, %c0_11] : memref<2x4xf32, #tpu.memory_space<vmem>>, vector<2x4xf32>
      tpu.vector_store %arg6[%c0_10, %c0_11], %11 {strides = array<i32>} : memref<2x4xf32, #tpu.memory_space<vmem>>, vector<2x4xf32>,
    } else {
    }
    %c0 = arith.constant 0 : index
    %c0_1 = arith.constant 0 : index
    %c0_2 = arith.constant 0 : index
    %3 = vector.load %arg2[%c0, %c0_1, %c0_2] : memref<2x4x256xf32, #tpu.memory_space<vmem>>, vector<2x4x256xf32>
    %c0_3 = arith.constant 0 : index
    %c0_4 = arith.constant 0 : index
    %4 = vector.load %arg6[%c0_3, %c0_4] : memref<2x4xf32, #tpu.memory_space<vmem>>, vector<2x4xf32>
    %cst = arith.constant dense<0.000000e+00> : vector<2x4xf32>
    %5 = vector.multi_reduction <add>, %3, %cst [2] : vector<2x4x256xf32> to vector<2x4xf32>
    %6 = arith.addf %4, %5 : vector<2x4xf32>
    %c0_5 = arith.constant 0 : index
    %c0_6 = arith.constant 0 : index
    %7 = vector.load %arg6[%c0_5, %c0_6] : memref<2x4xf32, #tpu.memory_space<vmem>>, vector<2x4xf32>
    tpu.vector_store %arg6[%c0_5, %c0_6], %6 {strides = array<i32>} : memref<2x4xf32, #tpu.memory_space<vmem>>, vector<2x4xf32>,
    %c0_i32_7 = arith.constant 0 : i32
    %8 = arith.cmpi eq, %arg1, %c0_i32_7 : i32
    %9 = arith.extui %8 : i1 to i32
    %c0_i32_8 = arith.constant 0 : i32
    %10 = arith.cmpi ne, %9, %c0_i32_8 : i32
    scf.if %10 {
      %c0_9 = arith.constant 0 : index
      %c0_10 = arith.constant 0 : index
      %11 = vector.load %arg6[%c0_9, %c0_10] : memref<2x4xf32, #tpu.memory_space<vmem>>, vector<2x4xf32>
      %c0_11 = arith.constant 0 : index
      %c0_12 = arith.constant 0 : index
      %12 = vector.load %arg3[%c0_11, %c0_12] : memref<4x128xf32, #tpu.memory_space<vmem>>, vector<4x128xf32>
      %cst_13 = arith.constant dense<0.000000e+00> : vector<2x128xf32>
      %13 = tpu.matmul %11, %12, %cst_13 {dimension_numbers = #tpu.dot_dimension_numbers<[1], [0], [0], [1], [0, 0, 1, 1], [], []>} : vector<2x4xf32>, vector<4x128xf32>, vector<2x128xf32> -> vector<2x128xf32>
      %c0_14 = arith.constant 0 : index
      %c0_15 = arith.constant 0 : index
      %14 = vector.load %arg4[%c0_14, %c0_15] : memref<1x128xf32, #tpu.memory_space<vmem>>, vector<1x128xf32>
      %15 = vector.broadcast %14 : vector<1x128xf32> to vector<2x128xf32>
      %16 = arith.addf %13, %15 : vector<2x128xf32>
      %c0_16 = arith.constant 0 : index
      %c0_17 = arith.constant 0 : index
      %17 = vector.load %arg5[%c0_16, %c0_17] : memref<2x128xf32, #tpu.memory_space<vmem>>, vector<2x128xf32>
      tpu.vector_store %arg5[%c0_16, %c0_17], %16 {strides = array<i32>} : memref<2x128xf32, #tpu.memory_space<vmem>>, vector<2x128xf32>,
    } else {
    }
    return
  }
  func.func @transform_0(%arg0: i32, %arg1: i32) -> (i32, i32, i32) {
    %c0_i32 = arith.constant 0 : i32
    %c0_i32_0 = arith.constant 0 : i32
    return %arg0, %c0_i32, %arg1 : i32, i32, i32
  }
  func.func @transform_1(%arg0: i32, %arg1: i32) -> (i32, i32) {
    %c0_i32 = arith.constant 0 : i32
    %c0_i32_0 = arith.constant 0 : i32
    %c0_i32_1 = arith.constant 0 : i32
    return %c0_i32, %c0_i32_0 : i32, i32
  }
  func.func @transform_2(%arg0: i32, %arg1: i32) -> (i32, i32) {
    %c0_i32 = arith.constant 0 : i32
    %c0_i32_0 = arith.constant 0 : i32
    %c0_i32_1 = arith.constant 0 : i32
    return %c0_i32, %c0_i32_0 : i32, i32
  }
  func.func @transform_3(%arg0: i32, %arg1: i32) -> (i32, i32) {
    %c0_i32 = arith.constant 0 : i32
    %c0_i32_0 = arith.constant 0 : i32
    return %arg0, %c0_i32 : i32, i32
  }
}

module attributes {stable_mosaic.version = 11 : i64} {
  func.func @kernel(%arg0: i32, %arg1: i32, %arg2: memref<2x4x256xf32, #tpu.memory_space<vmem>>, %arg3: memref<4x128xf32, #tpu.memory_space<vmem>>, %arg4: memref<1x128xf32, #tpu.memory_space<vmem>>, %arg5: memref<2x128xf32, #tpu.memory_space<vmem>>, %arg6: memref<2x4xf32, #tpu.memory_space<vmem>>) attributes {dimension_semantics = [#tpu.dimension_semantics<parallel>, #tpu.dimension_semantics<arbitrary>], iteration_bounds = array<i64: 1, 1>, scalar_prefetch = 0 : i64, scratch_operands = 1 : i64, tpu.core_type = #tpu.core_type<tc>, window_params = [{transform_indices = @transform_0, window_bounds = array<i64: 2, 4, 256>}, {pipeline_mode = #tpu.pipeline_mode<synchronous>, transform_indices = @transform_1, window_bounds = array<i64: 4, 128>}, {pipeline_mode = #tpu.pipeline_mode<synchronous>, transform_indices = @transform_2, window_bounds = array<i64: 1, 128>}, {transform_indices = @transform_3, window_bounds = array<i64: 2, 128>}]} {
    %c0_i32 = arith.constant 0 : i32
    %0 = arith.cmpi eq, %arg1, %c0_i32 : i32
    %1 = arith.extui %0 : i1 to i32
    %c0_i32_0 = arith.constant 0 : i32
    %2 = arith.cmpi ne, %1, %c0_i32_0 : i32
    scf.if %2 {
      %cst_9 = arith.constant 0.000000e+00 : f32
      %11 = vector.broadcast %cst_9 : f32 to vector<2x4xf32>
      %c0_10 = arith.constant 0 : index
      %c0_11 = arith.constant 0 : index
      %12 = vector.load %arg6[%c0_10, %c0_11] : memref<2x4xf32, #tpu.memory_space<vmem>>, vector<2x4xf32>
      tpu.vector_store %arg6[%c0_10, %c0_11], %11 {strides = array<i32>} : memref<2x4xf32, #tpu.memory_space<vmem>>, vector<2x4xf32>,
    } else {
    }
    %c0 = arith.constant 0 : index
    %c0_1 = arith.constant 0 : index
    %c0_2 = arith.constant 0 : index
    %3 = vector.load %arg2[%c0, %c0_1, %c0_2] : memref<2x4x256xf32, #tpu.memory_space<vmem>>, vector<2x4x256xf32>
    %c0_3 = arith.constant 0 : index
    %c0_4 = arith.constant 0 : index
    %4 = vector.load %arg6[%c0_3, %c0_4] : memref<2x4xf32, #tpu.memory_space<vmem>>, vector<2x4xf32>
    %cst = arith.constant dense<0.000000e+00> : vector<2x4xf32>
    %5 = vector.multi_reduction <add>, %3, %cst [2] : vector<2x4x256xf32> to vector<2x4xf32>
    %6 = arith.addf %4, %5 : vector<2x4xf32>
    %c0_5 = arith.constant 0 : index
    %c0_6 = arith.constant 0 : index
    %7 = vector.load %arg6[%c0_5, %c0_6] : memref<2x4xf32, #tpu.memory_space<vmem>>, vector<2x4xf32>
    tpu.vector_store %arg6[%c0_5, %c0_6], %6 {strides = array<i32>} : memref<2x4xf32, #tpu.memory_space<vmem>>, vector<2x4xf32>,
    %c0_i32_7 = arith.constant 0 : i32
    %8 = arith.cmpi eq, %arg1, %c0_i32_7 : i32
    %9 = arith.extui %8 : i1 to i32
    %c0_i32_8 = arith.constant 0 : i32
    %10 = arith.cmpi ne, %9, %c0_i32_8 : i32
    scf.if %10 {
      %c0_9 = arith.constant 0 : index
      %c0_10 = arith.constant 0 : index
      %11 = vector.load %arg6[%c0_9, %c0_10] : memref<2x4xf32, #tpu.memory_space<vmem>>, vector<2x4xf32>
      %c0_11 = arith.constant 0 : index
      %c0_12 = arith.constant 0 : index
      %12 = vector.load %arg3[%c0_11, %c0_12] : memref<4x128xf32, #tpu.memory_space<vmem>>, vector<4x128xf32>
      %cst_13 = arith.constant dense<0.000000e+00> : vector<2x128xf32>
      %13 = tpu.matmul %11, %12, %cst_13 {dimension_numbers = #tpu.dot_dimension_numbers<[1], [0], [0], [1], [0, 0, 1, 1], [], []>} : vector<2x4xf32>, vector<4x128xf32>, vector<2x128xf32> -> vector<2x128xf32>
      %c0_14 = arith.constant 0 : index
      %c0_15 = arith.constant 0 : index
      %14 = vector.load %arg4[%c0_14, %c0_15] : memref<1x128xf32, #tpu.memory_space<vmem>>, vector<1x128xf32>
      %15 = vector.broadcast %14 : vector<1x128xf32> to vector<2x128xf32>
      %16 = arith.addf %13, %15 : vector<2x128xf32>
      %c0_16 = arith.constant 0 : index
      %c0_17 = arith.constant 0 : index
      %17 = vector.load %arg5[%c0_16, %c0_17] : memref<2x128xf32, #tpu.memory_space<vmem>>, vector<2x128xf32>
      tpu.vector_store %arg5[%c0_16, %c0_17], %16 {strides = array<i32>} : memref<2x128xf32, #tpu.memory_space<vmem>>, vector<2x128xf32>,
    } else {
    }
    return
  }
  func.func @transform_0(%arg0: i32, %arg1: i32) -> (i32, i32, i32) {
    %c0_i32 = arith.constant 0 : i32
    %c0_i32_0 = arith.constant 0 : i32
    return %arg0, %c0_i32, %arg1 : i32, i32, i32
  }
  func.func @transform_1(%arg0: i32, %arg1: i32) -> (i32, i32) {
    %c0_i32 = arith.constant 0 : i32
    %c0_i32_0 = arith.constant 0 : i32
    %c0_i32_1 = arith.constant 0 : i32
    return %c0_i32, %c0_i32_0 : i32, i32
  }
  func.func @transform_2(%arg0: i32, %arg1: i32) -> (i32, i32) {
    %c0_i32 = arith.constant 0 : i32
    %c0_i32_0 = arith.constant 0 : i32
    %c0_i32_1 = arith.constant 0 : i32
    return %c0_i32, %c0_i32_0 : i32, i32
  }
  func.func @transform_3(%arg0: i32, %arg1: i32) -> (i32, i32) {
    %c0_i32 = arith.constant 0 : i32
    %c0_i32_0 = arith.constant 0 : i32
    return %arg0, %c0_i32 : i32, i32
  }
}

</mosaic_0001>

<bundles_post_ra>
// kernel: tpu_custom_call.1
= control target key start
LH: loop header
LB: loop body
LE: loop exit
PB: predicated region body
PF: predicated region fallthrough
CT: control target
= control target key end

     0   :  { %8 = vsyncpa [#allocation4], 0  ;;  %s355_s0 = inlined_call_operand.hbm [shape: f32[2,4,256], index: 0, kind: input, shape index: {}]   ;;  %s356_s1 = inlined_call_operand.hbm [shape: f32[4,128], index: 1, kind: input, shape index: {}]   ;;  %s357_s2 = inlined_call_operand.vmem [shape: f32[1,128], index: 2, kind: input, shape index: {}]   ;;  %s358_s3 = inlined_call_operand.hbm [shape: f32[2,128], index: 3, kind: output, shape index: {}]  }
   0x1   :  { %9 = vsyncpa [#allocation7], 0 }
   0x2   :  { %10 = vsyncpa [#allocation5], 0  ;;  %s282_s12 = smov [#allocation3]   ;;  %s210_s16 = scalar_lea.hbm %s355_s0, 256 }
   0x3   :  { %s16_s13 = sshll.u32 %s282_s12, 4  ;;  %p211_p0 = scmp.ne.s32.totalorder %s355_s0, %s210_s16  ;;  %s17_s13 = int_to_ptr.vmem [resolvable:$true] %s16_s13 }
   0x4   :  { %p214_p1 = scmp.lt.u32.totalorder %s210_s16, %s355_s0 }
   0x6   :  { %p216_p2 = pnand %p214_p1, %p211_p0 }
   0x8   :  { %219 = shalt.err (!%p216_p2)
}
   0x9   :  { %s220_s21 = scalar_lea.vmem %s17_s13, 256  ;;  %p225_p4 = scmp.lt.s32.totalorder %s17_s13, %s17_s13 }
   0xa   :  { %p221_p3 = scmp.ne.s32.totalorder %s17_s13, %s220_s21  ;;  %p226_p5 = scmp.lt.s32.totalorder %s220_s21, %s220_s21 }
   0xc   :  { %p227_p6 = por %p226_p5, %p225_p4 }
   0xe   :  { %p228_p7 = pnand %p227_p6, %p221_p3 }
  0x10   :  { %231 = shalt.err (!%p228_p7)
}
  0x11   :  { %s283_s22 = smov 128   ;;  %s284_s23 = smov 8  }
  0x12   :  { %22 = dma.hbm_to_vmem [thread:$0]  %s355_s0, 256, %s17_s13, [#allocation4], %s283_s22, %s283_s22, %s284_s23  }
  0x13   :  { %s285_s26 = smov [#allocation6]   ;;  %s232_s30 = scalar_lea.hbm %s356_s1, 64 }
  0x14   :  { %s29_s27 = sshll.u32 %s285_s26, 4  ;;  %p233_p8 = scmp.ne.s32.totalorder %s356_s1, %s232_s30  ;;  %s30_s27 = int_to_ptr.vmem [resolvable:$true] %s29_s27 }
  0x15   :  { %p236_p9 = scmp.lt.u32.totalorder %s232_s30, %s356_s1 }
  0x17   :  { %p238_p10 = pnand %p236_p9, %p233_p8 }
  0x19   :  { %241 = shalt.err (!%p238_p10)
}
  0x1a   :  { %s242_s8 = scalar_lea.vmem %s30_s27, 64  ;;  %p247_p12 = scmp.lt.s32.totalorder %s30_s27, %s30_s27 }
  0x1b   :  { %p243_p11 = scmp.ne.s32.totalorder %s30_s27, %s242_s8  ;;  %p248_p13 = scmp.lt.s32.totalorder %s242_s8, %s242_s8 }
  0x1d   :  { %p249_p0 = por %p248_p13, %p247_p12 }
  0x1f   :  { %p250_p1 = pnand %p249_p0, %p243_p11 }
  0x21   :  { %253 = shalt.err (!%p250_p1)
}
  0x22   :  { %32 = dma.hbm_to_vmem [thread:$0]  %s356_s1, 64, %s30_s27, [#allocation7]  }
  0x23   :  { %276 = dma.done.wait [#allocation4], 256  }
  0x24   :  { %277 = vsyncadd [#allocation4], 4294967040 }
  0x25   :  { %278 = dma.done.wait [#allocation7], 64  }
  0x26   :  { %279 = vsyncadd [#allocation7], 4294967232  ;;  %vm56_vm0 = vcmask 1043456   ;;  %v47_v0 = vld [vmem:[#allocation3] sm:$0xff]  ;;  %v48_v1 = vld [vmem:[#allocation3 + $0x8] sm:$0xff]  ;;  %vm45_vm1 = vcmask 25600   ;;  %v69_v12 = vlaneseq }
  0x27   :  { %v52_v2 = vcombine.high %v47_v0, %v47_v0  ;;  %v57_v3 = vsel %vm56_vm0, %v47_v0, 0.0  ;;  %v53_v4 = vcombine.high %v48_v1, %v48_v1  ;;  %v62_v6 = vsel %vm56_vm0, %v48_v1, 0.0  ;;  %v89_v11 = vld [vmem:[#allocation6] sm:$0xf]  ;;  %v191_v24 = vld [vmem:[%s357_s2] ss:$0 sm:$0xff] }
  0x28   :  { %v286_v10 = vmov 0.0   ;;  %vm287_vm2 = vmmov 0   ;;  %v70_v13 = vand.u32 127, %v69_v12  ;;  %v72_v14 = vshrl.u32 %v69_v12, 7  ;;  %s288_s11 = smov [#allocation8]  }
  0x29   :  { %v58_v5 = vsel %vm56_vm0, %v52_v2, 0.0  ;;  %v63_v7 = vsel %vm56_vm0, %v53_v4, 0.0  ;;  %46 = vst.msk [vmem:[#allocation2] sm:$0x3] %vm45_vm1, %v286_v10  ;;  %196 = vmatprep.subr.mxu0 %v286_v10  ;;  %198 = vmatprep.mubr.msk.f32.mxu0 %vm287_vm2, %v286_v10  ;;  %vm79_vm3 = vcmask 1041409   ;;  %vm97_vm4 = vcmask 31744  }
  0x2a   :  { %v59_v8 = vadd.f32 %v58_v5, %v57_v3  ;;  %v64_v9 = vadd.f32 %v63_v7, %v62_v6  ;;  %197 = vmatpush3.msk.msra.mxu0 %vm56_vm0, %v89_v11  ;;  %v73_v16 = vsub.s32 %v70_v13, %v72_v14  ;;  %s181_s12 = sshll.u32 %s288_s11, 4  ;;  %s182_s12 = int_to_ptr.vmem [resolvable:$true] %s181_s12 }
  0x2b   :  { %s254_s13 = scalar_lea.vmem %s182_s12, 32  ;;  %p259_p3 = scmp.lt.s32.totalorder %s182_s12, %s182_s12 }
  0x2c   :  { %60 = vadd.xlane.f32.xlu0 %v59_v8  ;;  %p255_p2 = scmp.ne.s32.totalorder %s182_s12, %s254_s13  ;;  %p260_p4 = scmp.lt.s32.totalorder %s254_s13, %s254_s13 }
  0x2e   :  { %p261_p5 = por %p260_p4, %p259_p3 }
  0x30   :  { %65 = vadd.xlane.f32.xlu0 %v64_v9  ;;  %v49_v20 = vld [vmem:[#allocation2] sm:$0x3]  ;;  %p262_p6 = pnand %p261_p5, %p255_p2 }
  0xb9   :  { %v61_v15 = vpop.xlane.xlu0 %60 }
  0xba   :  { %v74_v18 = vrot.slane %v61_v15, %v73_v16 }
  0xbd   :  { %v66_v17 = vpop.xlane.xlu0 %65 }
  0xbe   :  { %v78_v19 = vrot.slane %v66_v17, %v73_v16 }
  0xc0   :  { %v80_v21 = vsel %vm79_vm3, %v78_v19, %v74_v18 }
  0xc1   :  { %v82_v22 = vadd.f32 %v80_v21, %v49_v20 }
  0xc3   :  { %84 = vst.msk [vmem:[#allocation2] sm:$0x3] %vm45_vm1, %v82_v22 }
  0xca   :  { %v88_v23 = vld [vmem:[#allocation2] sm:$0x3] }
  0xcb   :  { %199 = vmatmul.mubr.msk.f32.vlgmr.msra.gmra.mrb[0].mxu0 %vm97_vm4, %v88_v23 }
 0x19e   :  { %v170_v25 = vpop.f32.mrb[0].mxu0 }
 0x19f   :  { %v171_v26 = vadd.f32 %v191_v24, %v170_v25  ;;  %v200_v27 = vpop.f32.mrb[1].mxu0 }
 0x1a1   :  { %174 = vst [vmem:[#allocation8] sm:$0x3] %v171_v26 }
 0x1a2   :  { %265 = shalt.err (!%p262_p6)
}
 0x1a3   :  { %s266_s16 = scalar_lea.hbm %s358_s3, 32 }
 0x1a4   :  { %p267_p7 = scmp.ne.s32.totalorder %s358_s3, %s266_s16  ;;  %p270_p8 = scmp.lt.u32.totalorder %s266_s16, %s358_s3 }
 0x1a6   :  { %p272_p9 = pnand %p270_p8, %p267_p7 }
 0x1a8   :  { %275 = shalt.err (!%p272_p9)
}
 0x1a9   :  { %184 = dma.vmem_to_hbm [thread:$0]  %s182_s12, 32, %s358_s3, [#allocation5]  }
 0x1aa   :  { %280 = dma.done.wait [#allocation5], 32  }
 0x1ab   :  { %281 = vsyncadd [#allocation5], 4294967264 }
 0x1ac   :  { %188 = vsyncpa [#allocation4], 1 }
 0x1ad   :  { %189 = vsyncpa [#allocation7], 1 }
 0x1ae   :  { %190 = vsyncpa [#allocation5], 1 }

// kernel: tpu_custom_call.1
= control target key start
LH: loop header
LB: loop body
LE: loop exit
PB: predicated region body
PF: predicated region fallthrough
CT: control target
= control target key end

     0   :  { %8 = vsyncpa [#allocation4], 0  ;;  %s355_s0 = inlined_call_operand.hbm [shape: f32[2,4,256], index: 0, kind: input, shape index: {}]   ;;  %s356_s1 = inlined_call_operand.hbm [shape: f32[4,128], index: 1, kind: input, shape index: {}]   ;;  %s357_s2 = inlined_call_operand.vmem [shape: f32[1,128], index: 2, kind: input, shape index: {}]   ;;  %s358_s3 = inlined_call_operand.hbm [shape: f32[2,128], index: 3, kind: output, shape index: {}]  }
   0x1   :  { %9 = vsyncpa [#allocation7], 0 }
   0x2   :  { %10 = vsyncpa [#allocation5], 0  ;;  %s282_s12 = smov [#allocation3]   ;;  %s210_s16 = scalar_lea.hbm %s355_s0, 256 }
   0x3   :  { %s16_s13 = sshll.u32 %s282_s12, 4  ;;  %p211_p0 = scmp.ne.s32.totalorder %s355_s0, %s210_s16  ;;  %s17_s13 = int_to_ptr.vmem [resolvable:$true] %s16_s13 }
   0x4   :  { %p214_p1 = scmp.lt.u32.totalorder %s210_s16, %s355_s0 }
   0x6   :  { %p216_p2 = pnand %p214_p1, %p211_p0 }
   0x8   :  { %219 = shalt.err (!%p216_p2)
}
   0x9   :  { %s220_s21 = scalar_lea.vmem %s17_s13, 256  ;;  %p225_p4 = scmp.lt.s32.totalorder %s17_s13, %s17_s13 }
   0xa   :  { %p221_p3 = scmp.ne.s32.totalorder %s17_s13, %s220_s21  ;;  %p226_p5 = scmp.lt.s32.totalorder %s220_s21, %s220_s21 }
   0xc   :  { %p227_p6 = por %p226_p5, %p225_p4 }
   0xe   :  { %p228_p7 = pnand %p227_p6, %p221_p3 }
  0x10   :  { %231 = shalt.err (!%p228_p7)
}
  0x11   :  { %s283_s22 = smov 128   ;;  %s284_s23 = smov 8  }
  0x12   :  { %22 = dma.hbm_to_vmem [thread:$0]  %s355_s0, 256, %s17_s13, [#allocation4], %s283_s22, %s283_s22, %s284_s23  }
  0x13   :  { %s285_s26 = smov [#allocation6]   ;;  %s232_s30 = scalar_lea.hbm %s356_s1, 64 }
  0x14   :  { %s29_s27 = sshll.u32 %s285_s26, 4  ;;  %p233_p8 = scmp.ne.s32.totalorder %s356_s1, %s232_s30  ;;  %s30_s27 = int_to_ptr.vmem [resolvable:$true] %s29_s27 }
  0x15   :  { %p236_p9 = scmp.lt.u32.totalorder %s232_s30, %s356_s1 }
  0x17   :  { %p238_p10 = pnand %p236_p9, %p233_p8 }
  0x19   :  { %241 = shalt.err (!%p238_p10)
}
  0x1a   :  { %s242_s8 = scalar_lea.vmem %s30_s27, 64  ;;  %p247_p12 = scmp.lt.s32.totalorder %s30_s27, %s30_s27 }
  0x1b   :  { %p243_p11 = scmp.ne.s32.totalorder %s30_s27, %s242_s8  ;;  %p248_p13 = scmp.lt.s32.totalorder %s242_s8, %s242_s8 }
  0x1d   :  { %p249_p0 = por %p248_p13, %p247_p12 }
  0x1f   :  { %p250_p1 = pnand %p249_p0, %p243_p11 }
  0x21   :  { %253 = shalt.err (!%p250_p1)
}
  0x22   :  { %32 = dma.hbm_to_vmem [thread:$0]  %s356_s1, 64, %s30_s27, [#allocation7]  }
  0x23   :  { %276 = dma.done.wait [#allocation4], 256  }
  0x24   :  { %277 = vsyncadd [#allocation4], 4294967040 }
  0x25   :  { %278 = dma.done.wait [#allocation7], 64  }
  0x26   :  { %279 = vsyncadd [#allocation7], 4294967232  ;;  %vm56_vm0 = vcmask 1043456   ;;  %v47_v0 = vld [vmem:[#allocation3] sm:$0xff]  ;;  %v48_v1 = vld [vmem:[#allocation3 + $0x8] sm:$0xff]  ;;  %vm45_vm1 = vcmask 25600   ;;  %v69_v12 = vlaneseq }
  0x27   :  { %v52_v2 = vcombine.high %v47_v0, %v47_v0  ;;  %v57_v3 = vsel %vm56_vm0, %v47_v0, 0.0  ;;  %v53_v4 = vcombine.high %v48_v1, %v48_v1  ;;  %v62_v6 = vsel %vm56_vm0, %v48_v1, 0.0  ;;  %v89_v11 = vld [vmem:[#allocation6] sm:$0xf]  ;;  %v191_v24 = vld [vmem:[%s357_s2] ss:$0 sm:$0xff] }
  0x28   :  { %v286_v10 = vmov 0.0   ;;  %vm287_vm2 = vmmov 0   ;;  %v70_v13 = vand.u32 127, %v69_v12  ;;  %v72_v14 = vshrl.u32 %v69_v12, 7  ;;  %s288_s11 = smov [#allocation8]  }
  0x29   :  { %v58_v5 = vsel %vm56_vm0, %v52_v2, 0.0  ;;  %v63_v7 = vsel %vm56_vm0, %v53_v4, 0.0  ;;  %46 = vst.msk [vmem:[#allocation2] sm:$0x3] %vm45_vm1, %v286_v10  ;;  %196 = vmatprep.subr.mxu0 %v286_v10  ;;  %198 = vmatprep.mubr.msk.f32.mxu0 %vm287_vm2, %v286_v10  ;;  %vm79_vm3 = vcmask 1041409   ;;  %vm97_vm4 = vcmask 31744  }
  0x2a   :  { %v59_v8 = vadd.f32 %v58_v5, %v57_v3  ;;  %v64_v9 = vadd.f32 %v63_v7, %v62_v6  ;;  %197 = vmatpush3.msk.msra.mxu0 %vm56_vm0, %v89_v11  ;;  %v73_v16 = vsub.s32 %v70_v13, %v72_v14  ;;  %s181_s12 = sshll.u32 %s288_s11, 4  ;;  %s182_s12 = int_to_ptr.vmem [resolvable:$true] %s181_s12 }
  0x2b   :  { %s254_s13 = scalar_lea.vmem %s182_s12, 32  ;;  %p259_p3 = scmp.lt.s32.totalorder %s182_s12, %s182_s12 }
  0x2c   :  { %60 = vadd.xlane.f32.xlu0 %v59_v8  ;;  %p255_p2 = scmp.ne.s32.totalorder %s182_s12, %s254_s13  ;;  %p260_p4 = scmp.lt.s32.totalorder %s254_s13, %s254_s13 }
  0x2e   :  { %p261_p5 = por %p260_p4, %p259_p3 }
  0x30   :  { %65 = vadd.xlane.f32.xlu0 %v64_v9  ;;  %v49_v20 = vld [vmem:[#allocation2] sm:$0x3]  ;;  %p262_p6 = pnand %p261_p5, %p255_p2 }
  0xb9   :  { %v61_v15 = vpop.xlane.xlu0 %60 }
  0xba   :  { %v74_v18 = vrot.slane %v61_v15, %v73_v16 }
  0xbd   :  { %v66_v17 = vpop.xlane.xlu0 %65 }
  0xbe   :  { %v78_v19 = vrot.slane %v66_v17, %v73_v16 }
  0xc0   :  { %v80_v21 = vsel %vm79_vm3, %v78_v19, %v74_v18 }
  0xc1   :  { %v82_v22 = vadd.f32 %v80_v21, %v49_v20 }
  0xc3   :  { %84 = vst.msk [vmem:[#allocation2] sm:$0x3] %vm45_vm1, %v82_v22 }
  0xca   :  { %v88_v23 = vld [vmem:[#allocation2] sm:$0x3] }
  0xcb   :  { %199 = vmatmul.mubr.msk.f32.vlgmr.msra.gmra.mrb[0].mxu0 %vm97_vm4, %v88_v23 }
 0x19e   :  { %v170_v25 = vpop.f32.mrb[0].mxu0 }
 0x19f   :  { %v171_v26 = vadd.f32 %v191_v24, %v170_v25  ;;  %v200_v27 = vpop.f32.mrb[1].mxu0 }
 0x1a1   :  { %174 = vst [vmem:[#allocation8] sm:$0x3] %v171_v26 }
 0x1a2   :  { %265 = shalt.err (!%p262_p6)
}
 0x1a3   :  { %s266_s16 = scalar_lea.hbm %s358_s3, 32 }
 0x1a4   :  { %p267_p7 = scmp.ne.s32.totalorder %s358_s3, %s266_s16  ;;  %p270_p8 = scmp.lt.u32.totalorder %s266_s16, %s358_s3 }
 0x1a6   :  { %p272_p9 = pnand %p270_p8, %p267_p7 }
 0x1a8   :  { %275 = shalt.err (!%p272_p9)
}
 0x1a9   :  { %184 = dma.vmem_to_hbm [thread:$0]  %s182_s12, 32, %s358_s3, [#allocation5]  }
 0x1aa   :  { %280 = dma.done.wait [#allocation5], 32  }
 0x1ab   :  { %281 = vsyncadd [#allocation5], 4294967264 }
 0x1ac   :  { %188 = vsyncpa [#allocation4], 1 }
 0x1ad   :  { %189 = vsyncpa [#allocation7], 1 }
 0x1ae   :  { %190 = vsyncpa [#allocation5], 1 }

</bundles_post_ra>
